<compile_context>
chip_gen: v5e
topology: v5e:2x2
jax: 0.10.0
libtpu: 0.0.40
codegen_flags: <defaults>
</compile_context>

<pallas_src>
import functools

import jax
import jax.numpy as jnp
from jax.experimental import pallas as pl
from jax.experimental.pallas import tpu as pltpu


def _round_up(x: int, m: int) -> int:
    return ((x + m - 1) // m) * m


def _device_profile():
    """Generation-specific knobs: bf16 RBF math, #TensorCores, VMEM limit."""
    try:
        kind = jax.devices()[0].device_kind.lower()
    except Exception:  # pragma: no cover - defensive
        kind = ""
    is_tpu = "tpu" in kind
    older = any(t in kind for t in ("v2", "v3", "v4", "v5"))
    use_bf16_rbf = is_tpu and not older                 # bf16 VPU/EUP only on v6e / v7x
    is_v7 = is_tpu and not older and any(t in kind for t in ("v7", "7x", "tpu7"))
    n_cores = 2 if is_v7 else 1                         # v7x: 2 TCs per chip
    vmem_limit = (48 if is_v7 else 64) * 1024 * 1024    # v7x only has 64 MiB physical
    return use_bf16_rbf, n_cores, vmem_limit


@functools.lru_cache(maxsize=None)
def _build_fused_fastkan_call(n_pad: int, block_n: int, dims: tuple,
                              num_grids: int, eps: float,
                              use_bf16_rbf: bool, vmem_limit: int):
    """Build one pallas_call running the whole FastKAN stack on a batch tile."""
    num_layers = len(dims) - 1
    out_dim = dims[-1]

    def kernel(*refs):
        x_ref, out_ref = refs[0], refs[-1]
        prm = refs[1:-1]  # 3 refs per layer: Gmat, b2, W

        h = x_ref[...].astype(jnp.float32)                   # [bn, D0]
        for l in range(num_layers):
            gmat_ref, b2_ref, w_ref = prm[3 * l:3 * l + 3]

            # LayerNorm stats in f32, single-pass variance.
            mean = jnp.mean(h, axis=-1, keepdims=True)
            msq = jnp.mean(h * h, axis=-1, keepdims=True)
            var = msq - mean * mean
            xn = (h - mean) * jax.lax.rsqrt(var + eps)       # [bn, Din]

            # Affine + 1/denom + G-way lane replication as one tiny MXU matmul,
            # then the grid constants as a bias add.
            t = jnp.dot(xn.astype(jnp.bfloat16), gmat_ref[...],
                        preferred_element_type=jnp.float32)  # [bn, G*Din]
            arg = t + b2_ref[...]
            if use_bf16_rbf:          # bf16 VPU/EUP on v6e / v7x
                arg = arg.astype(jnp.bfloat16)
            basis = jnp.exp(-(arg * arg)).astype(jnp.bfloat16)

            # Single K = G*Din contraction on the MXU, f32 accumulation.
            h = jnp.dot(basis, w_ref[...],
                        preferred_element_type=jnp.float32)  # [bn, Dout]

        out_ref[...] = h.astype(out_ref.dtype)               # un-padded [bn, C] store

    in_specs = [pl.BlockSpec((block_n, dims[0]), lambda i: (i, 0))]
    for l in range(num_layers):
        din, dout = dims[l], dims[l + 1]
        k = din * num_grids
        in_specs += [
            pl.BlockSpec((din, k), lambda i: (0, 0)),   # Gmat (bf16)
            pl.BlockSpec((1, k), lambda i: (0, 0)),     # b2 bias / grid constants
            pl.BlockSpec((k, dout), lambda i: (0, 0)),  # spline weight (bf16)
        ]

    return pl.pallas_call(
        kernel,
        out_shape=jax.ShapeDtypeStruct((n_pad, out_dim), jnp.float32),
        grid=(n_pad // block_n,),
        in_specs=in_specs,
        out_specs=pl.BlockSpec((block_n, out_dim), lambda i: (i, 0)),
        compiler_params=pltpu.CompilerParams(
            dimension_semantics=("parallel",),
            vmem_limit_bytes=vmem_limit),
    )


def init_fastkan_params(key, layers_hidden, num_grids=8,
                        grid_min=-2.0, grid_max=2.0,
                        spline_weight_init_scale=0.1):
    """Synthetic params matching the PyTorch module's shapes/init.

    Returns (kernel_params, torch_weights):
      kernel_params[l] = (Gmat, b2, W) as consumed by the Pallas kernel,
      torch_weights[l] = SplineLinear weight in torch [dout, din*G] layout
                         (column index d*G + g) for the pure-JAX reference.
    """
    denom = (grid_max - grid_min) / (num_grids - 1)
    inv_denom = 1.0 / denom
    grid = grid_min + denom * jnp.arange(num_grids, dtype=jnp.float32)

    kernel_params, torch_weights = [], []
    for din, dout in zip(layers_hidden[:-1], layers_hidden[1:]):
        key, wk = jax.random.split(key)
        # nn.init.trunc_normal_(std=scale), truncated at +-2 std.
        w_torch = (jax.random.truncated_normal(
            wk, -2.0, 2.0, (dout, din * num_grids), jnp.float32)
            * spline_weight_init_scale)
        torch_weights.append(w_torch)

        # Regroup [dout, din*G] (col = d*G + g) -> [G*din, dout] (row = g*din + d),
        # the lane order in which the kernel builds its basis.
        w_k = jnp.transpose(w_torch.T.reshape(din, num_grids, dout), (1, 0, 2))
        w_k = w_k.reshape(num_grids * din, dout).astype(jnp.bfloat16)

        gamma = jnp.ones((din,), jnp.float32)   # LayerNorm weight
        beta = jnp.zeros((din,), jnp.float32)   # LayerNorm bias
        # Gmat[d, g*din + d] = gamma[d] / denom   (affine scale + G-way replication)
        gmat = jnp.tile(jnp.diag(gamma * inv_denom), (1, num_grids)).astype(jnp.bfloat16)
        # b2[0, g*din + d]  = beta[d] / denom - grid[g] / denom
        b2 = (jnp.tile((beta * inv_denom).reshape(1, din), (1, num_grids))
              - jnp.repeat(grid * inv_denom, din).reshape(1, num_grids * din))
        kernel_params.append((gmat, b2.astype(jnp.float32), w_k))
    return kernel_params, torch_weights


def fastkan_forward(x, params, layers_hidden, num_grids=8,
                    block_n=2048, eps=1e-5, input_bf16=True):
    n = x.shape[0]
    use_bf16_rbf, n_cores, vmem_limit = _device_profile()

    block_n = min(block_n, _round_up(n, 8))
    steps = _round_up(n, block_n) // block_n
    if n_cores > 1 and steps < n_cores and n >= 16 * n_cores:
        # Give each TensorCore at least one grid step (v7x megacore sharding).
        n_pad = _round_up(n, 16 * n_cores)
        block_n = n_pad // n_cores
    else:
        n_pad = _round_up(n, block_n)

    x_in = x.astype(jnp.bfloat16 if input_bf16 else jnp.float32)
    if n_pad != n:
        x_in = jnp.pad(x_in, ((0, n_pad - n), (0, 0)))

    call = _build_fused_fastkan_call(n_pad, block_n, tuple(layers_hidden),
                                     num_grids, float(eps), use_bf16_rbf,
                                     vmem_limit)
    flat = [a for layer in params for a in layer]
    out = call(x_in, *flat)
    # TODO(synk): use_base_update / last_tanh branches not implemented (module defaults: False).
    return out[:n]


def fastkan_reference(x, torch_weights, num_grids=8, grid_min=-2.0, grid_max=2.0,
                      eps=1e-5):
    """Pure-JAX f32 reference following the PyTorch module exactly (gamma=1, beta=0)."""
    denom = (grid_max - grid_min) / (num_grids - 1)
    grid = grid_min + denom * jnp.arange(num_grids, dtype=jnp.float32)
    h = x.astype(jnp.float32)
    for w in torch_weights:  # w: [dout, din*G], torch layout (col = d*G + g)
        mean = jnp.mean(h, axis=-1, keepdims=True)
        var = jnp.mean((h - mean) ** 2, axis=-1, keepdims=True)
        xn = (h - mean) * jax.lax.rsqrt(var + eps)
        basis = jnp.exp(-(((xn[..., None] - grid) / denom) ** 2))   # [n, din, G]
        h = jnp.dot(basis.reshape(h.shape[0], -1), w.T,
                    precision=jax.lax.Precision.HIGHEST)
    return h


if __name__ == "__main__":
    # FastKAN(D=16, C=4, mlp_dim=[32, 32]) -> layers_hidden = [16, 32, 32, 4]
    D, C = 16, 4
    mlp_dim = [32, 32]
    num_grids = 8
    layers_hidden = [D] + mlp_dim + [C]

    key = jax.random.PRNGKey(0)
    key, xk = jax.random.split(key)
    n_batch = 16
    x = jax.random.normal(xk, (n_batch, D), jnp.float32)

    params, torch_weights = init_fastkan_params(key, layers_hidden,
                                                num_grids=num_grids)

    fwd = jax.jit(functools.partial(fastkan_forward,
                                    layers_hidden=layers_hidden,
                                    num_grids=num_grids))
    out = jax.block_until_ready(fwd(x, params))
    assert out.shape == (n_batch, C), out.shape

    ref = fastkan_reference(x, torch_weights, num_grids=num_grids)
    max_err = float(jnp.max(jnp.abs(out - ref)))
    # bf16 basis / weights / input (and bf16 exp on v6e+) => ~1e-2-level error budget.
    assert max_err < 0.15, f"max |out - ref| = {max_err}"
    print("KERNEL_OK")
</pallas_src>

<mosaic_0001>
module attributes {stable_mosaic.version = 11 : i64} {
  func.func @kernel(%arg0: i32, %arg1: memref<16x16xbf16, #tpu.memory_space<vmem>>, %arg2: memref<16x128xbf16, #tpu.memory_space<vmem>>, %arg3: memref<1x128xf32, #tpu.memory_space<vmem>>, %arg4: memref<128x32xbf16, #tpu.memory_space<vmem>>, %arg5: memref<32x256xbf16, #tpu.memory_space<vmem>>, %arg6: memref<1x256xf32, #tpu.memory_space<vmem>>, %arg7: memref<256x32xbf16, #tpu.memory_space<vmem>>, %arg8: memref<32x256xbf16, #tpu.memory_space<vmem>>, %arg9: memref<1x256xf32, #tpu.memory_space<vmem>>, %arg10: memref<256x4xbf16, #tpu.memory_space<vmem>>, %arg11: memref<16x4xf32, #tpu.memory_space<vmem>>) attributes {dimension_semantics = [#tpu.dimension_semantics<parallel>], iteration_bounds = array<i64: 1>, scalar_prefetch = 0 : i64, scratch_operands = 0 : i64, tpu.core_type = #tpu.core_type<tc>, window_params = [{transform_indices = @transform_0, window_bounds = array<i64: 16, 16>}, {pipeline_mode = #tpu.pipeline_mode<synchronous>, transform_indices = @transform_1, window_bounds = array<i64: 16, 128>}, {pipeline_mode = #tpu.pipeline_mode<synchronous>, transform_indices = @transform_2, window_bounds = array<i64: 1, 128>}, {pipeline_mode = #tpu.pipeline_mode<synchronous>, transform_indices = @transform_3, window_bounds = array<i64: 128, 32>}, {pipeline_mode = #tpu.pipeline_mode<synchronous>, transform_indices = @transform_4, window_bounds = array<i64: 32, 256>}, {pipeline_mode = #tpu.pipeline_mode<synchronous>, transform_indices = @transform_5, window_bounds = array<i64: 1, 256>}, {pipeline_mode = #tpu.pipeline_mode<synchronous>, transform_indices = @transform_6, window_bounds = array<i64: 256, 32>}, {pipeline_mode = #tpu.pipeline_mode<synchronous>, transform_indices = @transform_7, window_bounds = array<i64: 32, 256>}, {pipeline_mode = #tpu.pipeline_mode<synchronous>, transform_indices = @transform_8, window_bounds = array<i64: 1, 256>}, {pipeline_mode = #tpu.pipeline_mode<synchronous>, transform_indices = @transform_9, window_bounds = array<i64: 256, 4>}, {transform_indices = @transform_10, window_bounds = array<i64: 16, 4>}]} {
    %c0 = arith.constant 0 : index
    %c0_0 = arith.constant 0 : index
    %0 = vector.load %arg1[%c0, %c0_0] : memref<16x16xbf16, #tpu.memory_space<vmem>>, vector<16x16xbf16>
    %1 = arith.extf %0 : vector<16x16xbf16> to vector<16x16xf32>
    %cst = arith.constant dense<0.000000e+00> : vector<16xf32>
    %2 = vector.multi_reduction <add>, %1, %cst [1] : vector<16x16xf32> to vector<16xf32>
    %3 = vector.shape_cast %2 : vector<16xf32> to vector<16x1xf32>
    %cst_1 = arith.constant 1.600000e+01 : f32
    %4 = vector.broadcast %cst_1 : f32 to vector<16x1xf32>
    %5 = arith.divf %3, %4 : vector<16x1xf32>
    %6 = arith.mulf %1, %1 : vector<16x16xf32>
    %cst_2 = arith.constant dense<0.000000e+00> : vector<16xf32>
    %7 = vector.multi_reduction <add>, %6, %cst_2 [1] : vector<16x16xf32> to vector<16xf32>
    %8 = vector.shape_cast %7 : vector<16xf32> to vector<16x1xf32>
    %cst_3 = arith.constant 1.600000e+01 : f32
    %9 = vector.broadcast %cst_3 : f32 to vector<16x1xf32>
    %10 = arith.divf %8, %9 : vector<16x1xf32>
    %11 = arith.mulf %5, %5 : vector<16x1xf32>
    %12 = arith.subf %10, %11 : vector<16x1xf32>
    %13 = vector.broadcast %5 : vector<16x1xf32> to vector<16x16xf32>
    %14 = arith.subf %1, %13 : vector<16x16xf32>
    %cst_4 = arith.constant 9.99999974E-6 : f32
    %15 = vector.broadcast %cst_4 : f32 to vector<16x1xf32>
    %16 = arith.addf %12, %15 : vector<16x1xf32>
    %17 = math.rsqrt %16 : vector<16x1xf32>
    %18 = vector.broadcast %17 : vector<16x1xf32> to vector<16x16xf32>
    %19 = arith.mulf %14, %18 : vector<16x16xf32>
    %20 = arith.truncf %19 : vector<16x16xf32> to vector<16x16xbf16>
    %c0_5 = arith.constant 0 : index
    %c0_6 = arith.constant 0 : index
    %21 = vector.load %arg2[%c0_5, %c0_6] : memref<16x128xbf16, #tpu.memory_space<vmem>>, vector<16x128xbf16>
    %cst_7 = arith.constant dense<0.000000e+00> : vector<16x128xf32>
    %22 = tpu.matmul %20, %21, %cst_7 {dimension_numbers = #tpu.dot_dimension_numbers<[1], [0], [0], [1], [0, 0, 1, 1], [], []>} : vector<16x16xbf16>, vector<16x128xbf16>, vector<16x128xf32> -> vector<16x128xf32>
    %c0_8 = arith.constant 0 : index
    %c0_9 = arith.constant 0 : index
    %23 = vector.load %arg3[%c0_8, %c0_9] : memref<1x128xf32, #tpu.memory_space<vmem>>, vector<1x128xf32>
    %24 = vector.broadcast %23 : vector<1x128xf32> to vector<16x128xf32>
    %25 = arith.addf %22, %24 : vector<16x128xf32>
    %26 = arith.mulf %25, %25 : vector<16x128xf32>
    %cst_10 = arith.constant 0.000000e+00 : f32
    %27 = vector.broadcast %cst_10 : f32 to vector<16x128xf32>
    %28 = arith.subf %27, %26 : vector<16x128xf32>
    %29 = math.exp %28 : vector<16x128xf32>
    %30 = arith.truncf %29 : vector<16x128xf32> to vector<16x128xbf16>
    %c0_11 = arith.constant 0 : index
    %c0_12 = arith.constant 0 : index
    %31 = vector.load %arg4[%c0_11, %c0_12] : memref<128x32xbf16, #tpu.memory_space<vmem>>, vector<128x32xbf16>
    %cst_13 = arith.constant dense<0.000000e+00> : vector<16x32xf32>
    %32 = tpu.matmul %30, %31, %cst_13 {dimension_numbers = #tpu.dot_dimension_numbers<[1], [0], [0], [1], [0, 0, 1, 1], [], []>} : vector<16x128xbf16>, vector<128x32xbf16>, vector<16x32xf32> -> vector<16x32xf32>
    %cst_14 = arith.constant dense<0.000000e+00> : vector<16xf32>
    %33 = vector.multi_reduction <add>, %32, %cst_14 [1] : vector<16x32xf32> to vector<16xf32>
    %34 = vector.shape_cast %33 : vector<16xf32> to vector<16x1xf32>
    %cst_15 = arith.constant 3.200000e+01 : f32
    %35 = vector.broadcast %cst_15 : f32 to vector<16x1xf32>
    %36 = arith.divf %34, %35 : vector<16x1xf32>
    %37 = arith.mulf %32, %32 : vector<16x32xf32>
    %cst_16 = arith.constant dense<0.000000e+00> : vector<16xf32>
    %38 = vector.multi_reduction <add>, %37, %cst_16 [1] : vector<16x32xf32> to vector<16xf32>
    %39 = vector.shape_cast %38 : vector<16xf32> to vector<16x1xf32>
    %cst_17 = arith.constant 3.200000e+01 : f32
    %40 = vector.broadcast %cst_17 : f32 to vector<16x1xf32>
    %41 = arith.divf %39, %40 : vector<16x1xf32>
    %42 = arith.mulf %36, %36 : vector<16x1xf32>
    %43 = arith.subf %41, %42 : vector<16x1xf32>
    %44 = vector.broadcast %36 : vector<16x1xf32> to vector<16x32xf32>
    %45 = arith.subf %32, %44 : vector<16x32xf32>
    %cst_18 = arith.constant 9.99999974E-6 : f32
    %46 = vector.broadcast %cst_18 : f32 to vector<16x1xf32>
    %47 = arith.addf %43, %46 : vector<16x1xf32>
    %48 = math.rsqrt %47 : vector<16x1xf32>
    %49 = vector.broadcast %48 : vector<16x1xf32> to vector<16x32xf32>
    %50 = arith.mulf %45, %49 : vector<16x32xf32>
    %51 = arith.truncf %50 : vector<16x32xf32> to vector<16x32xbf16>
    %c0_19 = arith.constant 0 : index
    %c0_20 = arith.constant 0 : index
    %52 = vector.load %arg5[%c0_19, %c0_20] : memref<32x256xbf16, #tpu.memory_space<vmem>>, vector<32x256xbf16>
    %cst_21 = arith.constant dense<0.000000e+00> : vector<16x256xf32>
    %53 = tpu.matmul %51, %52, %cst_21 {dimension_numbers = #tpu.dot_dimension_numbers<[1], [0], [0], [1], [0, 0, 1, 1], [], []>} : vector<16x32xbf16>, vector<32x256xbf16>, vector<16x256xf32> -> vector<16x256xf32>
    %c0_22 = arith.constant 0 : index
    %c0_23 = arith.constant 0 : index
    %54 = vector.load %arg6[%c0_22, %c0_23] : memref<1x256xf32, #tpu.memory_space<vmem>>, vector<1x256xf32>
    %55 = vector.broadcast %54 : vector<1x256xf32> to vector<16x256xf32>
    %56 = arith.addf %53, %55 : vector<16x256xf32>
    %57 = arith.mulf %56, %56 : vector<16x256xf32>
    %cst_24 = arith.constant 0.000000e+00 : f32
    %58 = vector.broadcast %cst_24 : f32 to vector<16x256xf32>
    %59 = arith.subf %58, %57 : vector<16x256xf32>
    %60 = math.exp %59 : vector<16x256xf32>
    %61 = arith.truncf %60 : vector<16x256xf32> to vector<16x256xbf16>
    %c0_25 = arith.constant 0 : index
    %c0_26 = arith.constant 0 : index
    %62 = vector.load %arg7[%c0_25, %c0_26] : memref<256x32xbf16, #tpu.memory_space<vmem>>, vector<256x32xbf16>
    %cst_27 = arith.constant dense<0.000000e+00> : vector<16x32xf32>
    %63 = tpu.matmul %61, %62, %cst_27 {dimension_numbers = #tpu.dot_dimension_numbers<[1], [0], [0], [1], [0, 0, 1, 1], [], []>} : vector<16x256xbf16>, vector<256x32xbf16>, vector<16x32xf32> -> vector<16x32xf32>
    %cst_28 = arith.constant dense<0.000000e+00> : vector<16xf32>
    %64 = vector.multi_reduction <add>, %63, %cst_28 [1] : vector<16x32xf32> to vector<16xf32>
    %65 = vector.shape_cast %64 : vector<16xf32> to vector<16x1xf32>
    %cst_29 = arith.constant 3.200000e+01 : f32
    %66 = vector.broadcast %cst_29 : f32 to vector<16x1xf32>
    %67 = arith.divf %65, %66 : vector<16x1xf32>
    %68 = arith.mulf %63, %63 : vector<16x32xf32>
    %cst_30 = arith.constant dense<0.000000e+00> : vector<16xf32>
    %69 = vector.multi_reduction <add>, %68, %cst_30 [1] : vector<16x32xf32> to vector<16xf32>
    %70 = vector.shape_cast %69 : vector<16xf32> to vector<16x1xf32>
    %cst_31 = arith.constant 3.200000e+01 : f32
    %71 = vector.broadcast %cst_31 : f32 to vector<16x1xf32>
    %72 = arith.divf %70, %71 : vector<16x1xf32>
    %73 = arith.mulf %67, %67 : vector<16x1xf32>
    %74 = arith.subf %72, %73 : vector<16x1xf32>
    %75 = vector.broadcast %67 : vector<16x1xf32> to vector<16x32xf32>
    %76 = arith.subf %63, %75 : vector<16x32xf32>
    %cst_32 = arith.constant 9.99999974E-6 : f32
    %77 = vector.broadcast %cst_32 : f32 to vector<16x1xf32>
    %78 = arith.addf %74, %77 : vector<16x1xf32>
    %79 = math.rsqrt %78 : vector<16x1xf32>
    %80 = vector.broadcast %79 : vector<16x1xf32> to vector<16x32xf32>
    %81 = arith.mulf %76, %80 : vector<16x32xf32>
    %82 = arith.truncf %81 : vector<16x32xf32> to vector<16x32xbf16>
    %c0_33 = arith.constant 0 : index
    %c0_34 = arith.constant 0 : index
    %83 = vector.load %arg8[%c0_33, %c0_34] : memref<32x256xbf16, #tpu.memory_space<vmem>>, vector<32x256xbf16>
    %cst_35 = arith.constant dense<0.000000e+00> : vector<16x256xf32>
    %84 = tpu.matmul %82, %83, %cst_35 {dimension_numbers = #tpu.dot_dimension_numbers<[1], [0], [0], [1], [0, 0, 1, 1], [], []>} : vector<16x32xbf16>, vector<32x256xbf16>, vector<16x256xf32> -> vector<16x256xf32>
    %c0_36 = arith.constant 0 : index
    %c0_37 = arith.constant 0 : index
    %85 = vector.load %arg9[%c0_36, %c0_37] : memref<1x256xf32, #tpu.memory_space<vmem>>, vector<1x256xf32>
    %86 = vector.broadcast %85 : vector<1x256xf32> to vector<16x256xf32>
    %87 = arith.addf %84, %86 : vector<16x256xf32>
    %88 = arith.mulf %87, %87 : vector<16x256xf32>
    %cst_38 = arith.constant 0.000000e+00 : f32
    %89 = vector.broadcast %cst_38 : f32 to vector<16x256xf32>
    %90 = arith.subf %89, %88 : vector<16x256xf32>
    %91 = math.exp %90 : vector<16x256xf32>
    %92 = arith.truncf %91 : vector<16x256xf32> to vector<16x256xbf16>
    %c0_39 = arith.constant 0 : index
    %c0_40 = arith.constant 0 : index
    %93 = vector.load %arg10[%c0_39, %c0_40] : memref<256x4xbf16, #tpu.memory_space<vmem>>, vector<256x4xbf16>
    %cst_41 = arith.constant dense<0.000000e+00> : vector<16x4xf32>
    %94 = tpu.matmul %92, %93, %cst_41 {dimension_numbers = #tpu.dot_dimension_numbers<[1], [0], [0], [1], [0, 0, 1, 1], [], []>} : vector<16x256xbf16>, vector<256x4xbf16>, vector<16x4xf32> -> vector<16x4xf32>
    %c0_42 = arith.constant 0 : index
    %c0_43 = arith.constant 0 : index
    %95 = vector.load %arg11[%c0_42, %c0_43] : memref<16x4xf32, #tpu.memory_space<vmem>>, vector<16x4xf32>
    tpu.vector_store %arg11[%c0_42, %c0_43], %94 {strides = array<i32>} : memref<16x4xf32, #tpu.memory_space<vmem>>, vector<16x4xf32>,
    return
  }
  func.func @transform_0(%arg0: i32) -> (i32, i32) {
    %c0_i32 = arith.constant 0 : i32
    %c0_i32_0 = arith.constant 0 : i32
    return %arg0, %c0_i32 : i32, i32
  }
  func.func @transform_1(%arg0: i32) -> (i32, i32) {
    %c0_i32 = arith.constant 0 : i32
    %c0_i32_0 = arith.constant 0 : i32
    %c0_i32_1 = arith.constant 0 : i32
    return %c0_i32, %c0_i32_0 : i32, i32
  }
  func.func @transform_2(%arg0: i32) -> (i32, i32) {
    %c0_i32 = arith.constant 0 : i32
    %c0_i32_0 = arith.constant 0 : i32
    %c0_i32_1 = arith.constant 0 : i32
    return %c0_i32, %c0_i32_0 : i32, i32
  }
  func.func @transform_3(%arg0: i32) -> (i32, i32) {
    %c0_i32 = arith.constant 0 : i32
    %c0_i32_0 = arith.constant 0 : i32
    %c0_i32_1 = arith.constant 0 : i32
    return %c0_i32, %c0_i32_0 : i32, i32
  }
  func.func @transform_4(%arg0: i32) -> (i32, i32) {
    %c0_i32 = arith.constant 0 : i32
    %c0_i32_0 = arith.constant 0 : i32
    %c0_i32_1 = arith.constant 0 : i32
    return %c0_i32, %c0_i32_0 : i32, i32
  }
  func.func @transform_5(%arg0: i32) -> (i32, i32) {
    %c0_i32 = arith.constant 0 : i32
    %c0_i32_0 = arith.constant 0 : i32
    %c0_i32_1 = arith.constant 0 : i32
    return %c0_i32, %c0_i32_0 : i32, i32
  }
  func.func @transform_6(%arg0: i32) -> (i32, i32) {
    %c0_i32 = arith.constant 0 : i32
    %c0_i32_0 = arith.constant 0 : i32
    %c0_i32_1 = arith.constant 0 : i32
    return %c0_i32, %c0_i32_0 : i32, i32
  }
  func.func @transform_7(%arg0: i32) -> (i32, i32) {
    %c0_i32 = arith.constant 0 : i32
    %c0_i32_0 = arith.constant 0 : i32
    %c0_i32_1 = arith.constant 0 : i32
    return %c0_i32, %c0_i32_0 : i32, i32
  }
  func.func @transform_8(%arg0: i32) -> (i32, i32) {
    %c0_i32 = arith.constant 0 : i32
    %c0_i32_0 = arith.constant 0 : i32
    %c0_i32_1 = arith.constant 0 : i32
    return %c0_i32, %c0_i32_0 : i32, i32
  }
  func.func @transform_9(%arg0: i32) -> (i32, i32) {
    %c0_i32 = arith.constant 0 : i32
    %c0_i32_0 = arith.constant 0 : i32
    %c0_i32_1 = arith.constant 0 : i32
    return %c0_i32, %c0_i32_0 : i32, i32
  }
  func.func @transform_10(%arg0: i32) -> (i32, i32) {
    %c0_i32 = arith.constant 0 : i32
    %c0_i32_0 = arith.constant 0 : i32
    return %arg0, %c0_i32 : i32, i32
  }
}

</mosaic_0001>

<bundles_post_ra>
// kernel: fastkan_forward.1
= control target key start
LH: loop header
LB: loop body
LE: loop exit
PB: predicated region body
PF: predicated region fallthrough
CT: control target
= control target key end

     0   :  { %vm40_vm0 = vcmask 130048   ;;  %v1089_v9 = vmov 16.0   ;;  %vm213_vm8 = vcmask 261120   ;;  %s1398_s0 = inlined_call_operand.vmem [shape: bf16[16,16], index: 0, kind: input, shape index: {}]   ;;  %s1399_s2 = inlined_call_operand.vmem [shape: f32[1,128], index: 2, kind: input, shape index: {}]   ;;  %s1400_s1 = inlined_call_operand.vmem [shape: bf16[16,128], index: 1, kind: input, shape index: {}]   ;;  %s1401_s3 = inlined_call_operand.vmem [shape: bf16[128,32], index: 3, kind: input, shape index: {}]   ;;  %s1402_s4 = inlined_call_operand.vmem [shape: bf16[32,256], index: 4, kind: input, shape index: {}]   ;;  %s1403_s6 = inlined_call_operand.vmem [shape: bf16[256,32], index: 6, kind: input, shape index: {}]   ;;  %s1404_s5 = inlined_call_operand.vmem [shape: f32[1,256], index: 5, kind: input, shape index: {}]   ;;  %s1405_s7 = inlined_call_operand.vmem [shape: bf16[32,256], index: 7, kind: input, shape index: {}]   ;;  %s1406_s9 = inlined_call_operand.vmem [shape: bf16[256,4], index: 9, kind: input, shape index: {}]   ;;  %s1407_s8 = inlined_call_operand.vmem [shape: f32[1,256], index: 8, kind: input, shape index: {}]   ;;  %s1408_s10 = inlined_call_operand.vmem [shape: f32[16,4], index: 10, kind: output, shape index: {}]  }
   0x1   :  { %v1047_v0 = vld [vmem:[%s1398_s0] sm:$0xff]   ;;  %1053 = vrcp.f32 %v1089_v9  ;;  %v1005_v24 = vld [vmem:[%s1401_s3 + $0x38] sm:$0xff]  ;;  %v1004_v27 = vld [vmem:[%s1401_s3 + $0x30] sm:$0xff] }
   0x2   :  { %v1149_v1 = vunpack.c.l.bf16 %v1047_v0  ;;  %v1155_v4 = vunpack.c.h.bf16 %v1047_v0  ;;  %v997_v16 = vld [vmem:[%s1400_s1] sm:$0xff]  ;;  %199 = vmatpush.bf16.msra.mxu1 %v1005_v24  ;;  %v1003_v52 = vld [vmem:[%s1401_s3 + $0x28] sm:$0xff]  ;;  %v1001_v54 = vld [vmem:[%s1401_s3 + $0x18] sm:$0xff] }
   0x3   :  { %119 = vmatpush.bf16.msra.mxu2 %v997_v16  ;;  %v1002_v53 = vld [vmem:[%s1401_s3 + $0x20] sm:$0xff]  ;;  %v1000_v55 = vld [vmem:[%s1401_s3 + $0x10] sm:$0xff]  ;;  %v999_v56 = vld [vmem:[%s1401_s3 + $0x8] sm:$0xff]  ;;  %v1090_v16 = vmov 32.0  }
   0x4   :  { %v41_v2 = vsel %vm40_vm0, %v1149_v1, 0.0  ;;  %v56_v3 = vmul.f32 %v1149_v1, %v1149_v1  ;;  %v57_v6 = vmul.f32 %v1155_v4, %v1155_v4  ;;  %v44_v7 = vsel %vm40_vm0, %v1155_v4, 0.0  ;;  %v998_v57 = vld [vmem:[%s1401_s3] sm:$0xff]  ;;  %v1008_v24 = vld [vmem:[%s1402_s4 + $0x14] sm:$0xf] }
   0x5   :  { %42 = vadd.xlane.f32.xlu0 %v41_v2  ;;  %v1052_v58 = vld [vmem:[%s1399_s2] ss:$0 sm:$0xff] }
   0x6   :  { %v58_v5 = vsel %vm40_vm0, %v56_v3, 0.0  ;;  %v61_v8 = vsel %vm40_vm0, %v57_v6, 0.0  ;;  %200 = vmatpush.bf16.msra.mxu1 %v1004_v27  ;;  %v845_v27 = vld [vmem:[%s1402_s4 + $0x18] sm:$0xf0] }
   0x7   :  { %59 = vadd.xlane.f32.xlu1 %v58_v5  ;;  %v1054_v10 = vpop.eup %1053 }
   0x8   :  { %v48_v11 = vmul.f32 16.0, %v1054_v10  ;;  %vm52_vm1 = vweird.f32 %v1054_v10 }
   0xa   :  { %v49_v12 = vsub.f32 1.0, %v48_v11  ;;  %201 = vmatpush.bf16.msra.mxu1 %v1003_v52 }
   0xc   :  { %v50_v13 = vmul.f32 %v1054_v10, %v49_v12 }
   0xd   :  { %45 = vadd.xlane.f32.xlu0 %v44_v7 }
   0xe   :  { %v51_v14 = vadd.f32 %v1054_v10, %v50_v13  ;;  %202 = vmatpush.bf16.msra.mxu1 %v1002_v53 }
   0xf   :  { %62 = vadd.xlane.f32.xlu1 %v61_v8 }
  0x10   :  { %v53_v15 = vsel %vm52_vm1, %v1054_v10, %v51_v14 }
  0x12   :  { %203 = vmatpush.bf16.msra.mxu1 %v1001_v54 }
  0x16   :  { %204 = vmatpush.bf16.msra.mxu1 %v1000_v55 }
  0x1a   :  { %205 = vmatpush.bf16.msra.mxu1 %v999_v56 }
  0x1e   :  { %206 = vmatpush.bf16.msra.mxu1 %v998_v57 }
  0x78   :  { %v43_v17 = vpop.xlane.xlu0 %42 }
  0x79   :  { %v54_v18 = vmul.f32 %v53_v15, %v43_v17 }
  0x7a   :  { %v60_v19 = vpop.xlane.xlu1 %59 }
  0x7b   :  { %v66_v20 = vmul.f32 %v54_v18, %v54_v18  ;;  %v64_v21 = vmul.f32 %v60_v19, %v53_v15  ;;  %v70_v46 = vsub.f32 %v1149_v1, %v54_v18 }
  0x7d   :  { %v68_v22 = vsub.f32 %v64_v21, %v66_v20 }
  0x7f   :  { %v72_v23 = vadd.f32 1e-05, %v68_v22  ;;  %v843_v22 = vld [vmem:[%s1402_s4 + $0x10] sm:$0xf] }
  0x80   :  { %v46_v25 = vpop.xlane.xlu0 %45 }
  0x81   :  { %1055 = vrsqrt.f32 %v72_v23  ;;  %v55_v26 = vmul.f32 %v53_v15, %v46_v25  ;;  %vm80_vm3 = vweird.f32 %v72_v23 }
  0x82   :  { %v63_v28 = vpop.xlane.xlu1 %62 }
  0x83   :  { %v67_v29 = vmul.f32 %v55_v26, %v55_v26  ;;  %v65_v30 = vmul.f32 %v63_v28, %v53_v15  ;;  %v71_v47 = vsub.f32 %v1155_v4, %v55_v26  ;;  %v848_v28 = vor.u32 %v1008_v24, %v845_v27 }
  0x85   :  { %v69_v31 = vsub.f32 %v65_v30, %v67_v29  ;;  %v835_v30 = vld [vmem:[%s1402_s4] sm:$0xf]  ;;  %323 = vmatpush.bf16.msra.mxu3 %v848_v28 }
  0x87   :  { %v1056_v32 = vpop.eup %1055  ;;  %v73_v33 = vadd.f32 1e-05, %v69_v31  ;;  %v1007_v31 = vld [vmem:[%s1402_s4 + $0x4] sm:$0xf0] }
  0x88   :  { %v75_v34 = vmul.f32 %v1056_v32, %v72_v23  ;;  %vm81_vm2 = vweird.f32 %v1056_v32  ;;  %v1009_v23 = vld [vmem:[%s1402_s4 + $0x14] sm:$0xf0] }
  0x89   :  { %1057 = vrsqrt.f32 %v73_v33  ;;  %vm82_vm5 = vmor %vm80_vm3, %vm81_vm2  ;;  %vm90_vm6 = vweird.f32 %v73_v33  ;;  %v844_v26 = vor.u32 %v1009_v23, %v843_v22 }
  0x8a   :  { %v76_v35 = vmul.f32 %v1056_v32, %v75_v34  ;;  %v836_v34 = vor.u32 %v1007_v31, %v835_v30 }
  0x8b   :  { %309 = vmatpush.bf16.msrb.mxu2 %v844_v26 }
  0x8c   :  { %v77_v36 = vmul.f32 0.5, %v76_v35  ;;  %v837_v35 = vld [vmem:[%s1402_s4 + $0x8] sm:$0xf0] }
  0x8e   :  { %v78_v38 = vsub.f32 1.5, %v77_v36 }
  0x8f   :  { %v1058_v37 = vpop.eup %1057  ;;  %310 = vmatpush.bf16.msrb.mxu2 %v836_v34 }
  0x90   :  { %v85_v39 = vmul.f32 %v1058_v37, %v73_v33  ;;  %v79_v42 = vmul.f32 %v1056_v32, %v78_v38  ;;  %vm91_vm4 = vweird.f32 %v1058_v37 }
  0x91   :  { %vm92_vm7 = vmor %vm90_vm6, %vm91_vm4  ;;  %vm789_vm6 = vcmask 31744  }
  0x92   :  { %v86_v40 = vmul.f32 %v1058_v37, %v85_v39  ;;  %v83_v44 = vsel %vm82_vm5, %v1056_v32, %v79_v42  ;;  %v1006_v32 = vld [vmem:[%s1402_s4 + $0x4] sm:$0xf]  ;;  %v1017_v42 = vld [vmem:[%s1403_s6 + $0x38] sm:$0xff] }
  0x93   :  { %v94_v49 = vmul.f32 %v83_v44, %v70_v46  ;;  %477 = vmatpush.bf16.msra.mxu0 %v1017_v42  ;;  %v1016_v46 = vld [vmem:[%s1403_s6 + $0x30] sm:$0xff] }
  0x94   :  { %v87_v41 = vmul.f32 0.5, %v86_v40 }
  0x96   :  { %v88_v43 = vsub.f32 1.5, %v87_v41 }
  0x97   :  { %478 = vmatpush.bf16.msra.mxu0 %v1016_v46 }
  0x98   :  { %v89_v45 = vmul.f32 %v1058_v37, %v88_v43  ;;  %v1025_v43 = vld [vmem:[%s1403_s6 + $0x78] sm:$0xff] }
  0x9a   :  { %v93_v48 = vsel %vm92_vm7, %v1058_v37, %v89_v45  ;;  %v840_v37 = vor.u32 %v1006_v32, %v837_v35 }
  0x9b   :  { %v95_v50 = vmul.f32 %v93_v48, %v71_v47  ;;  %v1024_v47 = vld [vmem:[%s1403_s6 + $0x70] sm:$0xff] }
  0x9c   :  { %324 = vmatpush.bf16.msra.mxu3 %v840_v37 }
  0x9d   :  { %v96_v51 = vpack.c.bf16 %v95_v50, %v94_v49 }
  0x9f   :  { %800 = vmatmul.msk.bf16.vlgmr.msra.gmra.mxu2 %vm40_vm0, %v96_v51 }
  0xa0   :  { %491 = vmatpush.bf16.msra.mxu2 %v1025_v43 }
  0xa4   :  { %492 = vmatpush.bf16.msra.mxu2 %v1024_v47 }
 0x122   :  { %v121_v59 = vpop.f32.mrf.mxu2 }
 0x123   :  { %v122_v60 = vadd.f32 %v1052_v58, %v121_v59 }
 0x125   :  { %v126_v61 = vmul.f32 %v122_v60, %v122_v60 }
 0x127   :  { %v128_v62 = vsub.f32 0.0, %v126_v61 }
 0x129   :  { %v130_v2 = vmul.f32 1.442695, %v128_v62 }
 0x12a   :  { %v123_v63 = vpop.f32.mrf.mxu2 }
 0x12b   :  { %v124_v0 = vadd.f32 %v1052_v58, %v123_v63  ;;  %1059 = vpow2.f32 %v130_v2 }
 0x12d   :  { %v127_v1 = vmul.f32 %v124_v0, %v124_v0 }
 0x12f   :  { %v129_v3 = vsub.f32 0.0, %v127_v1 }
 0x131   :  { %v132_v4 = vmul.f32 1.442695, %v129_v3  ;;  %v1060_v5 = vpop.eup %1059 }
 0x133   :  { %1061 = vpow2.f32 %v132_v4 }
 0x134   :  { %1063 = vrcp.f32 %v1090_v16  ;;  %v1011_v16 = vld [vmem:[%s1403_s6 + $0x8] sm:$0xff] }
 0x139   :  { %v1062_v6 = vpop.eup %1061 }
 0x13a   :  { %v134_v7 = vpack.c.bf16 %v1062_v6, %v1060_v5  ;;  %v1064_v17 = vpop.eup %1063 }
 0x13b   :  { %v221_v18 = vmul.f32 32.0, %v1064_v17  ;;  %vm225_vm9 = vweird.f32 %v1064_v17 }
 0x13c   :  { %207 = vmatmul.bf16.vlgmr.msra.gmra.mxu1 %v134_v7 }
 0x13d   :  { %v222_v19 = vsub.f32 1.0, %v221_v18  ;;  %v1010_v18 = vld [vmem:[%s1403_s6] sm:$0xff] }
 0x13f   :  { %v223_v20 = vmul.f32 %v1064_v17, %v222_v19  ;;  %v1018_v19 = vld [vmem:[%s1403_s6 + $0x40] sm:$0xff] }
 0x141   :  { %v224_v21 = vadd.f32 %v1064_v17, %v223_v20  ;;  %v274_v20 = vld [vmem:[%s1404_s5] sm:$0x3] }
 0x142   :  { %v277_v22 = vperm.slane %v274_v20, 1 }
 0x143   :  { %v1219_v25 = vsel %vm225_vm9, %v1064_v17, %v224_v21  ;;  %v1019_v17 = vld [vmem:[%s1403_s6 + $0x48] sm:$0xff]  ;;  %v276_v21 = vperm.slane %v274_v20, 0 }
 0x1b9   :  { %v1196_v8 = vpop.f32.mrf.mxu1 }
 0x1ba   :  { %v214_v9 = vsel %vm213_vm8, %v1196_v8, 0.0  ;;  %v229_v10 = vmul.f32 %v1196_v8, %v1196_v8 }
 0x1bb   :  { %215 = vadd.xlane.f32.xlu2 %v214_v9  ;;  %v1015_v9 = vld [vmem:[%s1403_s6 + $0x28] sm:$0xff] }
 0x1bc   :  { %v231_v11 = vsel %vm213_vm8, %v229_v10, 0.0  ;;  %v1023_v10 = vld [vmem:[%s1403_s6 + $0x68] sm:$0xff]  ;;  %479 = vmatpush.bf16.msra.mxu0 %v1015_v9 }
 0x1bd   :  { %232 = vadd.xlane.f32.xlu0 %v231_v11  ;;  %493 = vmatpush.bf16.msra.mxu2 %v1023_v10  ;;  %v1022_v11 = vld [vmem:[%s1403_s6 + $0x60] sm:$0xff] }
 0x1c1   :  { %v1203_v12 = vpop.f32.mrf.mxu1  ;;  %494 = vmatpush.bf16.msra.mxu2 %v1022_v11  ;;  %v1028_v11 = vld [vmem:[%s1405_s7 + $0x14] sm:$0xf] }
 0x1c2   :  { %v217_v13 = vsel %vm213_vm8, %v1203_v12, 0.0  ;;  %v230_v14 = vmul.f32 %v1203_v12, %v1203_v12 }
 0x1c3   :  { %218 = vadd.xlane.f32.xlu2 %v217_v13  ;;  %v1021_v13 = vld [vmem:[%s1403_s6 + $0x58] sm:$0xff] }
 0x1c4   :  { %v234_v15 = vsel %vm213_vm8, %v230_v14, 0.0  ;;  %v1012_v14 = vld [vmem:[%s1403_s6 + $0x10] sm:$0xff] }
 0x1c5   :  { %235 = vadd.xlane.f32.xlu1 %v234_v15  ;;  %495 = vmatpush.bf16.msra.mxu2 %v1021_v13  ;;  %v1020_v15 = vld [vmem:[%s1403_s6 + $0x50] sm:$0xff] }
 0x1c9   :  { %496 = vmatpush.bf16.msra.mxu2 %v1020_v15  ;;  %v1026_v15 = vld [vmem:[%s1405_s7 + $0x4] sm:$0xf] }
 0x1cd   :  { %497 = vmatpush.bf16.msra.mxu2 %v1019_v17 }
 0x1d1   :  { %498 = vmatpush.bf16.msra.mxu2 %v1018_v19 }
 0x22e   :  { %v216_v29 = vpop.xlane.xlu2 %215 }
 0x22f   :  { %v227_v33 = vmul.f32 %v1219_v25, %v216_v29 }
 0x230   :  { %v233_v36 = vpop.xlane.xlu0 %232 }
 0x231   :  { %v239_v38 = vmul.f32 %v227_v33, %v227_v33  ;;  %v237_v39 = vmul.f32 %v233_v36, %v1219_v25  ;;  %v243_v2 = vsub.f32 %v1196_v8, %v227_v33  ;;  %v1014_v8 = vld [vmem:[%s1403_s6 + $0x20] sm:$0xff] }
 0x232   :  { %480 = vmatpush.bf16.msra.mxu0 %v1014_v8 }
 0x233   :  { %v241_v40 = vsub.f32 %v237_v39, %v239_v38 }
 0x235   :  { %v245_v41 = vadd.f32 1e-05, %v241_v40 }
 0x236   :  { %v219_v44 = vpop.xlane.xlu2 %218 }
 0x237   :  { %1065 = vrsqrt.f32 %v245_v41  ;;  %v228_v45 = vmul.f32 %v1219_v25, %v219_v44  ;;  %vm253_vm11 = vweird.f32 %v245_v41 }
 0x238   :  { %v236_v48 = vpop.xlane.xlu1 %235 }
 0x239   :  { %v240_v49 = vmul.f32 %v228_v45, %v228_v45  ;;  %v238_v50 = vmul.f32 %v236_v48, %v1219_v25  ;;  %v244_v3 = vsub.f32 %v1203_v12, %v228_v45  ;;  %v1013_v12 = vld [vmem:[%s1403_s6 + $0x18] sm:$0xff] }
 0x23a   :  { %481 = vmatpush.bf16.msra.mxu0 %v1013_v12  ;;  %v927_v12 = vld [vmem:[%s1405_s7 + $0x18] sm:$0xf0] }
 0x23b   :  { %v242_v51 = vsub.f32 %v238_v50, %v240_v49 }
 0x23d   :  { %v1066_v52 = vpop.eup %1065  ;;  %v246_v53 = vadd.f32 1e-05, %v242_v51 }
 0x23e   :  { %v248_v54 = vmul.f32 %v1066_v52, %v245_v41  ;;  %vm254_vm10 = vweird.f32 %v1066_v52  ;;  %482 = vmatpush.bf16.msra.mxu0 %v1012_v14  ;;  %v930_v14 = vor.u32 %v1028_v11, %v927_v12 }
 0x23f   :  { %1067 = vrsqrt.f32 %v246_v53  ;;  %vm255_vm13 = vmor %vm253_vm11, %vm254_vm10  ;;  %vm263_vm14 = vweird.f32 %v246_v53 }
 0x240   :  { %v249_v55 = vmul.f32 %v1066_v52, %v248_v54 }
 0x242   :  { %v250_v56 = vmul.f32 0.5, %v249_v55  ;;  %483 = vmatpush.bf16.msra.mxu0 %v1011_v16  ;;  %v919_v16 = vld [vmem:[%s1405_s7 + $0x8] sm:$0xf0] }
 0x243   :  { %v922_v19 = vor.u32 %v1026_v15, %v919_v16 }
 0x244   :  { %v251_v58 = vsub.f32 1.5, %v250_v56 }
 0x245   :  { %v1068_v57 = vpop.eup %1067 }
 0x246   :  { %v258_v59 = vmul.f32 %v1068_v57, %v246_v53  ;;  %v252_v61 = vmul.f32 %v1066_v52, %v251_v58  ;;  %vm264_vm12 = vweird.f32 %v1068_v57  ;;  %484 = vmatpush.bf16.msra.mxu0 %v1010_v18 }
 0x247   :  { %vm265_vm15 = vmor %vm263_vm14, %vm264_vm12 }
 0x248   :  { %v259_v60 = vmul.f32 %v1068_v57, %v258_v59  ;;  %v256_v1 = vsel %vm255_vm13, %v1066_v52, %v252_v61 }
 0x249   :  { %v267_v5 = vmul.f32 %v256_v1, %v243_v2  ;;  %v917_v2 = vld [vmem:[%s1405_s7] sm:$0xf] }
 0x24a   :  { %v260_v62 = vmul.f32 0.5, %v259_v60 }
 0x24c   :  { %v261_v63 = vsub.f32 1.5, %v260_v62  ;;  %v925_v62 = vld [vmem:[%s1405_s7 + $0x10] sm:$0xf] }
 0x24e   :  { %v262_v0 = vmul.f32 %v1068_v57, %v261_v63  ;;  %v1029_v63 = vld [vmem:[%s1405_s7 + $0x14] sm:$0xf0] }
 0x250   :  { %v266_v4 = vsel %vm265_vm15, %v1068_v57, %v262_v0  ;;  %v926_v0 = vor.u32 %v1029_v63, %v925_v62  ;;  %v1038_v62 = vld [vmem:[%s1406_s9 + $0x40] sm:$0xff] }
 0x251   :  { %v268_v6 = vmul.f32 %v266_v4, %v244_v3  ;;  %v1027_v3 = vld [vmem:[%s1405_s7 + $0x4] sm:$0xf0] }
 0x252   :  { %593 = vmatpush.bf16.msrb.mxu3 %v926_v0 }
 0x253   :  { %v269_v7 = vpack.c.bf16 %v268_v6, %v267_v5  ;;  %v918_v5 = vor.u32 %v1027_v3, %v917_v2 }
 0x255   :  { %849 = vmatmul.msk.bf16.vlgmr.msrb.gmra.mxu2 %vm213_vm8, %v269_v7  ;;  %850 = vmatmul.msk.bf16.vlgmr.msra.gmra.mxu3 %vm213_vm8, %v269_v7 }
 0x256   :  { %594 = vmatpush.bf16.msrb.mxu3 %v918_v5 }
 0x25a   :  { %607 = vmatpush.bf16.msra.mxu3 %v930_v14 }
 0x25e   :  { %608 = vmatpush.bf16.msra.mxu3 %v922_v19 }
 0x2d8   :  { %v312_v23 = vpop.f32.mrf.mxu2  ;;  %v326_v24 = vpop.f32.mrf.mxu3 }
 0x2d9   :  { %v313_v26 = vadd.f32 %v312_v23, %v276_v21  ;;  %v327_v27 = vadd.f32 %v326_v24, %v277_v22 }
 0x2db   :  { %v331_v28 = vmul.f32 %v313_v26, %v313_v26  ;;  %v332_v29 = vmul.f32 %v327_v27, %v327_v27 }
 0x2dd   :  { %v335_v30 = vsub.f32 0.0, %v331_v28  ;;  %v336_v31 = vsub.f32 0.0, %v332_v29 }
 0x2df   :  { %v339_v36 = vmul.f32 1.442695, %v335_v30  ;;  %v341_v39 = vmul.f32 1.442695, %v336_v31  ;;  %v1037_v30 = vld [vmem:[%s1406_s9 + $0x38] sm:$0xff] }
 0x2e0   :  { %v314_v32 = vpop.f32.mrf.mxu2  ;;  %v328_v33 = vpop.f32.mrf.mxu3  ;;  %761 = vmatpush.bf16.msrb.mxu1 %v1037_v30 }
 0x2e1   :  { %v315_v34 = vadd.f32 %v314_v32, %v276_v21  ;;  %v329_v35 = vadd.f32 %v328_v33, %v277_v22  ;;  %1069 = vpow2.f32 %v339_v36 }
 0x2e2   :  { %1071 = vpow2.f32 %v341_v39 }
 0x2e3   :  { %v333_v37 = vmul.f32 %v315_v34, %v315_v34  ;;  %v334_v38 = vmul.f32 %v329_v35, %v329_v35 }
 0x2e5   :  { %v337_v40 = vsub.f32 0.0, %v333_v37  ;;  %v338_v41 = vsub.f32 0.0, %v334_v38 }
 0x2e7   :  { %v343_v42 = vmul.f32 1.442695, %v337_v40  ;;  %v345_v43 = vmul.f32 1.442695, %v338_v41  ;;  %v1070_v44 = vpop.eup %1069 }
 0x2e8   :  { %v1072_v45 = vpop.eup %1071 }
 0x2e9   :  { %1073 = vpow2.f32 %v343_v42 }
 0x2ea   :  { %1075 = vpow2.f32 %v345_v43 }
 0x2ef   :  { %v1074_v46 = vpop.eup %1073 }
 0x2f0   :  { %v1076_v47 = vpop.eup %1075  ;;  %v347_v48 = vpack.c.bf16 %v1074_v46, %v1070_v44  ;;  %v1034_v46 = vld [vmem:[%s1406_s9 + $0x20] sm:$0xff] }
 0x2f1   :  { %v348_v49 = vpack.c.bf16 %v1076_v47, %v1072_v45  ;;  %v1035_v45 = vld [vmem:[%s1406_s9 + $0x28] sm:$0xff]  ;;  %v1033_v47 = vld [vmem:[%s1406_s9 + $0x18] sm:$0xff] }
 0x2f2   :  { %485 = vmatmul.bf16.vlgmr.msra.gmra.mxu0 %v347_v48  ;;  %v1045_v48 = vld [vmem:[%s1406_s9 + $0x78] sm:$0xff] }
 0x2f3   :  { %499 = vmatmul.bf16.vlgmr.msra.gmra.mxu2 %v348_v49  ;;  %775 = vmatpush.bf16.msrb.mxu0 %v1045_v48  ;;  %v1032_v49 = vld [vmem:[%s1406_s9 + $0x10] sm:$0xff] }
 0x36f   :  { %v486_v50 = vpop.f32.mrf.mxu0 }
 0x376   :  { %v500_v51 = vpop.f32.mrf.mxu2 }
 0x377   :  { %v1295_v52 = vadd.f32 %v500_v51, %v486_v50  ;;  %v488_v56 = vpop.f32.mrf.mxu0  ;;  %v1044_v50 = vld [vmem:[%s1406_s9 + $0x70] sm:$0xff]  ;;  %v1031_v51 = vld [vmem:[%s1406_s9 + $0x8] sm:$0xff] }
 0x378   :  { %776 = vmatpush.bf16.msrb.mxu0 %v1044_v50 }
 0x379   :  { %v505_v53 = vsel %vm213_vm8, %v1295_v52, 0.0  ;;  %v513_v54 = vmul.f32 %v1295_v52, %v1295_v52 }
 0x37a   :  { %506 = vadd.xlane.f32.xlu2 %v505_v53  ;;  %v1030_v53 = vld [vmem:[%s1406_s9] sm:$0xff] }
 0x37b   :  { %v515_v55 = vsel %vm213_vm8, %v513_v54, 0.0  ;;  %v1042_v54 = vld [vmem:[%s1406_s9 + $0x60] sm:$0xff] }
 0x37c   :  { %516 = vadd.xlane.f32.xlu1 %v515_v55  ;;  %v1041_v55 = vld [vmem:[%s1406_s9 + $0x58] sm:$0xff] }
 0x37e   :  { %v502_v57 = vpop.f32.mrf.mxu2 }
 0x37f   :  { %v1302_v58 = vadd.f32 %v502_v57, %v488_v56  ;;  %v558_v56 = vld [vmem:[%s1407_s8] sm:$0x3] }
 0x380   :  { %v560_v57 = vperm.slane %v558_v56, 0 }
 0x381   :  { %v508_v59 = vsel %vm213_vm8, %v1302_v58, 0.0  ;;  %v514_v60 = vmul.f32 %v1302_v58, %v1302_v58 }
 0x382   :  { %509 = vadd.xlane.f32.xlu0 %v508_v59 }
 0x383   :  { %v518_v61 = vsel %vm213_vm8, %v514_v60, 0.0 }
 0x384   :  { %519 = vadd.xlane.f32.xlu2 %v518_v61  ;;  %v1039_v61 = vld [vmem:[%s1406_s9 + $0x48] sm:$0xff] }
 0x3ed   :  { %v507_v1 = vpop.xlane.xlu2 %506 }
 0x3ee   :  { %v511_v4 = vmul.f32 %v507_v1, %v1219_v25 }
 0x3ef   :  { %v517_v6 = vpop.xlane.xlu1 %516 }
 0x3f0   :  { %v523_v7 = vmul.f32 %v511_v4, %v511_v4  ;;  %v521_v9 = vmul.f32 %v517_v6, %v1219_v25  ;;  %v527_v39 = vsub.f32 %v1295_v52, %v511_v4  ;;  %v1043_v52 = vld [vmem:[%s1406_s9 + $0x68] sm:$0xff]  ;;  %v561_v6 = vperm.slane %v558_v56, 1 }
 0x3f1   :  { %777 = vmatpush.bf16.msrb.mxu0 %v1043_v52 }
 0x3f2   :  { %v525_v10 = vsub.f32 %v521_v9, %v523_v7 }
 0x3f4   :  { %v529_v8 = vadd.f32 1e-05, %v525_v10 }
 0x3f5   :  { %v510_v13 = vpop.xlane.xlu0 %509  ;;  %778 = vmatpush.bf16.msrb.mxu0 %v1042_v54 }
 0x3f6   :  { %1077 = vrsqrt.f32 %v529_v8  ;;  %v512_v17 = vmul.f32 %v510_v13, %v1219_v25  ;;  %vm537_vm1 = vweird.f32 %v529_v8 }
 0x3f7   :  { %v520_v18 = vpop.xlane.xlu2 %519 }
 0x3f8   :  { %v524_v20 = vmul.f32 %v512_v17, %v512_v17  ;;  %v522_v21 = vmul.f32 %v520_v18, %v1219_v25  ;;  %v1036_v25 = vld [vmem:[%s1406_s9 + $0x30] sm:$0xff]  ;;  %v528_v40 = vsub.f32 %v1302_v58, %v512_v17 }
 0x3f9   :  { %762 = vmatpush.bf16.msrb.mxu1 %v1036_v25  ;;  %779 = vmatpush.bf16.msrb.mxu0 %v1041_v55  ;;  %v1040_v58 = vld [vmem:[%s1406_s9 + $0x50] sm:$0xff] }
 0x3fa   :  { %v526_v22 = vsub.f32 %v522_v21, %v524_v20 }
 0x3fc   :  { %v1078_v23 = vpop.eup %1077  ;;  %v530_v24 = vadd.f32 1e-05, %v526_v22 }
 0x3fd   :  { %v532_v26 = vmul.f32 %v1078_v23, %v529_v8  ;;  %vm538_vm0 = vweird.f32 %v1078_v23  ;;  %763 = vmatpush.bf16.msrb.mxu1 %v1035_v45  ;;  %780 = vmatpush.bf16.msrb.mxu0 %v1040_v58 }
 0x3fe   :  { %1079 = vrsqrt.f32 %v530_v24  ;;  %vm539_vm3 = vmor %vm537_vm1, %vm538_vm0  ;;  %vm547_vm4 = vweird.f32 %v530_v24 }
 0x3ff   :  { %v533_v27 = vmul.f32 %v1078_v23, %v532_v26 }
 0x401   :  { %v534_v28 = vmul.f32 0.5, %v533_v27  ;;  %764 = vmatpush.bf16.msrb.mxu1 %v1034_v46  ;;  %781 = vmatpush.bf16.msrb.mxu0 %v1039_v61 }
 0x403   :  { %v535_v31 = vsub.f32 1.5, %v534_v28 }
 0x404   :  { %v1080_v29 = vpop.eup %1079 }
 0x405   :  { %v542_v32 = vmul.f32 %v1080_v29, %v530_v24  ;;  %v536_v34 = vmul.f32 %v1078_v23, %v535_v31  ;;  %vm548_vm2 = vweird.f32 %v1080_v29  ;;  %765 = vmatpush.bf16.msrb.mxu1 %v1033_v47  ;;  %782 = vmatpush.bf16.msrb.mxu0 %v1038_v62 }
 0x406   :  { %vm549_vm5 = vmor %vm547_vm4, %vm548_vm2 }
 0x407   :  { %v543_v33 = vmul.f32 %v1080_v29, %v542_v32  ;;  %v540_v38 = vsel %vm539_vm3, %v1078_v23, %v536_v34 }
 0x408   :  { %v551_v42 = vmul.f32 %v540_v38, %v527_v39 }
 0x409   :  { %v544_v35 = vmul.f32 0.5, %v543_v33  ;;  %766 = vmatpush.bf16.msrb.mxu1 %v1032_v49 }
 0x40b   :  { %v545_v36 = vsub.f32 1.5, %v544_v35 }
 0x40d   :  { %v546_v37 = vmul.f32 %v1080_v29, %v545_v36  ;;  %767 = vmatpush.bf16.msrb.mxu1 %v1031_v51 }
 0x40f   :  { %v550_v41 = vsel %vm549_vm5, %v1080_v29, %v546_v37 }
 0x410   :  { %v552_v43 = vmul.f32 %v550_v41, %v528_v40 }
 0x411   :  { %768 = vmatpush.bf16.msrb.mxu1 %v1030_v53 }
 0x412   :  { %v553_v44 = vpack.c.bf16 %v552_v43, %v551_v42 }
 0x414   :  { %931 = vmatmul.msk.bf16.vlgmr.msrb.gmra.mxu3 %vm213_vm8, %v553_v44 }
 0x424   :  { %932 = vmatmul.msk.bf16.vlgmr.msra.gmra.mxu3 %vm213_vm8, %v553_v44 }
 0x497   :  { %v596_v59 = vpop.f32.mrf.mxu3 }
 0x498   :  { %v597_v60 = vadd.f32 %v596_v59, %v560_v57 }
 0x49a   :  { %v615_v63 = vmul.f32 %v597_v60, %v597_v60 }
 0x49c   :  { %v619_v0 = vsub.f32 0.0, %v615_v63 }
 0x49e   :  { %v623_v4 = vmul.f32 1.442695, %v619_v0 }
 0x49f   :  { %v598_v1 = vpop.f32.mrf.mxu3 }
 0x4a0   :  { %v599_v2 = vadd.f32 %v598_v1, %v560_v57  ;;  %1081 = vpow2.f32 %v623_v4 }
 0x4a2   :  { %v617_v3 = vmul.f32 %v599_v2, %v599_v2 }
 0x4a4   :  { %v621_v5 = vsub.f32 0.0, %v617_v3 }
 0x4a6   :  { %v627_v7 = vmul.f32 1.442695, %v621_v5  ;;  %v1082_v11 = vpop.eup %1081 }
 0x4a7   :  { %v610_v9 = vpop.f32.mrf.mxu3 }
 0x4a8   :  { %1083 = vpow2.f32 %v627_v7  ;;  %v611_v10 = vadd.f32 %v610_v9, %v561_v6 }
 0x4aa   :  { %v616_v8 = vmul.f32 %v611_v10, %v611_v10 }
 0x4ac   :  { %v620_v13 = vsub.f32 0.0, %v616_v8 }
 0x4ae   :  { %v1084_v12 = vpop.eup %1083  ;;  %v625_v18 = vmul.f32 1.442695, %v620_v13 }
 0x4af   :  { %v612_v14 = vpop.f32.mrf.mxu3  ;;  %v631_v15 = vpack.c.bf16 %v1084_v12, %v1082_v11 }
 0x4b0   :  { %v613_v16 = vadd.f32 %v612_v14, %v561_v6  ;;  %1085 = vpow2.f32 %v625_v18 }
 0x4b1   :  { %769 = vmatmul.bf16.vlgmr.msrb.gmra.mxu1 %v631_v15 }
 0x4b2   :  { %v618_v17 = vmul.f32 %v613_v16, %v613_v16 }
 0x4b4   :  { %v622_v19 = vsub.f32 0.0, %v618_v17 }
 0x4b6   :  { %v629_v20 = vmul.f32 1.442695, %v622_v19  ;;  %v1086_v21 = vpop.eup %1085 }
 0x4b8   :  { %1087 = vpow2.f32 %v629_v20 }
 0x4be   :  { %v1088_v22 = vpop.eup %1087 }
 0x4bf   :  { %v632_v23 = vpack.c.bf16 %v1088_v22, %v1086_v21 }
 0x4c1   :  { %783 = vmatmul.bf16.vlgmr.msrb.gmra.mxu0 %v632_v23 }
 0x52e   :  { %v770_v24 = vpop.f32.mrf.mxu1 }
 0x536   :  { %v772_v28 = vpop.f32.mrf.mxu1 }
 0x53e   :  { %v784_v26 = vpop.f32.mrf.mxu0 }
 0x53f   :  { %v785_v27 = vadd.f32 %v784_v26, %v770_v24 }
 0x541   :  { %790 = vst.msk [vmem:[%s1408_s10] sm:$0xff] %vm789_vm6, %v785_v27 }
 0x546   :  { %v786_v29 = vpop.f32.mrf.mxu0 }
 0x547   :  { %v787_v30 = vadd.f32 %v786_v29, %v772_v28 }
 0x549   :  { %791 = vst.msk [vmem:[%s1408_s10 + $0x8] sm:$0xff] %vm789_vm6, %v787_v30 }

</bundles_post_ra>
